<compile_context>
chip_gen: v7x
topology: tpu7x:2x2x1
jax: 0.10.0
libtpu: 0.0.40
codegen_flags: <defaults>
</compile_context>

<pallas_src>
import jax
import jax.numpy as jnp
from jax import lax
from jax.experimental import pallas as pl
from jax.experimental.pallas import tpu as pltpu

_RED = 8          # sublane-tile rows kept in the resident accumulator
_NSHARD = 2       # leading "parallel" grid axis (uses both TCs on v7x)
_LOG_CLAMP = -100.0


def _bce_elem(p, t):
    # PyTorch binary_cross_entropy with the -100 log clamp, FMA form:
    # -(t*log(p) + (1-t)*log(1-p)) == -(log(1-p) + t*(log(p) - log(1-p)))
    log_p = jnp.maximum(jnp.log(p), _LOG_CLAMP)
    log_1p = jnp.maximum(jnp.log(1.0 - p), _LOG_CLAMP)
    return -(log_1p + t * (log_p - log_1p))


def _make_frame_kernel(BB, D):
    def kernel(fp_ref, tt_ref, len_ref, acc_ref):
        i = pl.program_id(1)

        @pl.when(i == 0)
        def _init():
            acc_ref[...] = jnp.zeros_like(acc_ref)

        # Cast to f32 BEFORE the logs (precision near p->0/1 and the -100 clamp).
        fp = fp_ref[...].astype(jnp.float32)            # (BB, T*D)
        tt = tt_ref[...].astype(jnp.float32)
        bce = _bce_elem(fp, tt)

        TD = fp.shape[1]
        # Flat col j = t*D + d;  (t < length)  <=>  (j < length*D).
        # Padded rows carry length == 0, so they are fully masked out.
        col = lax.broadcasted_iota(jnp.int32, (BB, TD), 1)
        mask = col < (len_ref[...] * D)                  # (BB, 1) int32 broadcast
        masked = jnp.where(mask, bce, 0.0)               # where, not *: no NaN leakage

        # Sublane-group reduction (BB, TD) -> (RED, TD): pure vreg adds, no XLU.
        acc_ref[...] += jnp.sum(masked.reshape(BB // _RED, _RED, TD), axis=0)

    return kernel


def _plan_tiling(B, TD):
    """Rows per block (multiple of 8, ~4 MiB f32-equivalent, capped), steps per
    shard and padded batch size."""
    bb = (4 * 1024 * 1024) // (4 * TD)
    bb = max(_RED, min(2048, (bb // _RED) * _RED))
    rows_per_shard = -(-B // _NSHARD)                       # ceil
    rows_per_shard = -(-rows_per_shard // _RED) * _RED      # round up to 8
    bb = min(bb, rows_per_shard)
    steps = -(-rows_per_shard // bb)
    b_pad = _NSHARD * steps * bb
    return bb, steps, b_pad


def clip_frame_bce_loss(clip_prob, frame_prob, tar_time, tar_clip, length):
    """clip_prob/tar_clip: (B, C); frame_prob/tar_time: (B, T, D); length: (B,).
    Returns scalar f32 loss."""
    B, T, D = frame_prob.shape
    TD = T * D

    # Lane-dense flatten; keep NATIVE dtype (no f32 materialization in HBM).
    fp2 = frame_prob.reshape(B, TD)
    tt2 = tar_time.reshape(B, TD)
    len2 = length.reshape(B, 1).astype(jnp.int32)

    BB, steps, B_pad = _plan_tiling(B, TD)
    if B_pad != B:
        # TODO(synk): ragged batches pay one pad-copy of the frame tensors; a
        # masked last-tile path would avoid it.
        pad = B_pad - B
        fp2 = jnp.pad(fp2, ((0, pad), (0, 0)))
        tt2 = jnp.pad(tt2, ((0, pad), (0, 0)))
        len2 = jnp.pad(len2, ((0, pad), (0, 0)))   # padded lengths == 0 -> masked

    itemsize = fp2.dtype.itemsize
    block_in_bytes = BB * TD * itemsize
    # 2 inputs x 2 buffers x block + headroom for f32 block temporaries.
    vmem_limit = int(min(48 << 20,
                         max(32 << 20,
                             4 * block_in_bytes + 6 * BB * TD * 4 + (2 << 20))))

    kernel = _make_frame_kernel(BB, D)
    partial = pl.pallas_call(
        kernel,
        out_shape=jax.ShapeDtypeStruct((_NSHARD, _RED, TD), jnp.float32),
        grid_spec=pltpu.PrefetchScalarGridSpec(
            num_scalar_prefetch=0,
            grid=(_NSHARD, steps),
            in_specs=[
                pl.BlockSpec((BB, TD), lambda s, i: (s * steps + i, 0)),  # frame_prob
                pl.BlockSpec((BB, TD), lambda s, i: (s * steps + i, 0)),  # tar_time
                pl.BlockSpec((BB, 1), lambda s, i: (s * steps + i, 0)),   # length (B,1)
            ],
            out_specs=pl.BlockSpec((None, _RED, TD), lambda s, i: (s, 0, 0)),
        ),
        compiler_params=pltpu.CompilerParams(
            dimension_semantics=("parallel", "arbitrary"),
            vmem_limit_bytes=vmem_limit,
        ),
        cost_estimate=pl.CostEstimate(
            flops=10 * B_pad * TD,
            transcendentals=2 * B_pad * TD,
            bytes_accessed=2 * B_pad * TD * itemsize + B_pad * 4
            + _NSHARD * _RED * TD * 4,
        ),
    )(fp2, tt2, len2)

    # Denominator == mask.sum() == sum_b clip(length_b, 0, T)  (matches PyTorch,
    # including NaN if all lengths are zero).
    mask_sum = jnp.sum(jnp.clip(length.astype(jnp.int32), 0, T)).astype(jnp.float32)
    frame_loss = jnp.sum(partial) / mask_sum

    # Tiny clip-level BCE ('mean'): plain JAX, fused by XLA for free.
    clip_loss = jnp.mean(_bce_elem(clip_prob.astype(jnp.float32),
                                   tar_clip.astype(jnp.float32)))
    return frame_loss + clip_loss


def _reference(clip_prob, frame_prob, tar_time, tar_clip, length):
    def bce(p, t):
        lp = jnp.maximum(jnp.log(p), _LOG_CLAMP)
        l1p = jnp.maximum(jnp.log(1.0 - p), _LOG_CLAMP)
        return -(t * lp + (1.0 - t) * l1p)

    B, T, D = frame_prob.shape
    mask = (jnp.arange(T)[None, :] < length[:, None]).astype(jnp.float32)  # (B, T)
    frame_loss = (bce(frame_prob, tar_time) * mask[:, :, None]).sum() / mask.sum()
    clip_loss = bce(clip_prob, tar_clip).mean()
    return frame_loss + clip_loss


if __name__ == "__main__":
    key = jax.random.PRNGKey(0)
    B, T, D = 2, 8, 32
    C = D  # clip-level classes match frame-level classes

    k1, k2, k3, k4, k5 = jax.random.split(key, 5)
    frame_prob = jax.nn.sigmoid(jax.random.normal(k1, (B, T, D), jnp.float32))
    tar_time = jax.random.bernoulli(k2, 0.3, (B, T, D)).astype(jnp.float32)
    clip_prob = jax.nn.sigmoid(jax.random.normal(k3, (B, C), jnp.float32))
    tar_clip = jax.random.bernoulli(k4, 0.5, (B, C)).astype(jnp.float32)
    length = jax.random.randint(k5, (B,), 1, T + 1).astype(jnp.int32)

    out = jax.block_until_ready(
        clip_frame_bce_loss(clip_prob, frame_prob, tar_time, tar_clip, length))

    ref = _reference(clip_prob, frame_prob, tar_time, tar_clip, length)
    assert jnp.allclose(out, ref, rtol=1e-5, atol=1e-5), (out, ref)

    print("KERNEL_OK")
</pallas_src>

<mosaic_0001>
module attributes {stable_mosaic.version = 11 : i64} {
  func.func @kernel(%arg0: i32, %arg1: i32, %arg2: memref<8x256xf32, #tpu.memory_space<vmem>>, %arg3: memref<8x256xf32, #tpu.memory_space<vmem>>, %arg4: memref<8x1xi32, #tpu.memory_space<vmem>>, %arg5: memref<1x8x256xf32, #tpu.memory_space<vmem>>) attributes {dimension_semantics = [#tpu.dimension_semantics<parallel>, #tpu.dimension_semantics<arbitrary>], iteration_bounds = array<i64: 2, 1>, scalar_prefetch = 0 : i64, scratch_operands = 0 : i64, tpu.core_type = #tpu.core_type<tc>, window_params = [{transform_indices = @transform_0, window_bounds = array<i64: 8, 256>}, {transform_indices = @transform_1, window_bounds = array<i64: 8, 256>}, {transform_indices = @transform_2, window_bounds = array<i64: 8, 1>}, {transform_indices = @transform_3, window_bounds = array<i64: 1, 8, 256>}]} {
    %c0_i32 = arith.constant 0 : i32
    %0 = arith.cmpi eq, %arg1, %c0_i32 : i32
    %1 = arith.extui %0 : i1 to i32
    %c0_i32_0 = arith.constant 0 : i32
    %2 = arith.cmpi ne, %1, %c0_i32_0 : i32
    scf.if %2 {
      %cst_17 = arith.constant 0.000000e+00 : f32
      %34 = vector.broadcast %cst_17 : f32 to vector<8x256xf32>
      %c0_18 = arith.constant 0 : index
      %c0_19 = arith.constant 0 : index
      %c0_20 = arith.constant 0 : index
      %35 = vector.load %arg5[%c0_18, %c0_19, %c0_20] : memref<1x8x256xf32, #tpu.memory_space<vmem>>, vector<1x8x256xf32>
      %36 = vector.shape_cast %35 : vector<1x8x256xf32> to vector<8x256xf32>
      %37 = vector.shape_cast %34 : vector<8x256xf32> to vector<1x8x256xf32>
      tpu.vector_store %arg5[%c0_18, %c0_19, %c0_20], %37 {strides = array<i32>} : memref<1x8x256xf32, #tpu.memory_space<vmem>>, vector<1x8x256xf32>,
    } else {
    }
    %c0 = arith.constant 0 : index
    %c0_1 = arith.constant 0 : index
    %3 = vector.load %arg2[%c0, %c0_1] : memref<8x256xf32, #tpu.memory_space<vmem>>, vector<8x256xf32>
    %c0_2 = arith.constant 0 : index
    %c0_3 = arith.constant 0 : index
    %4 = vector.load %arg3[%c0_2, %c0_3] : memref<8x256xf32, #tpu.memory_space<vmem>>, vector<8x256xf32>
    %5 = math.log %3 : vector<8x256xf32>
    %cst = arith.constant -1.000000e+02 : f32
    %6 = vector.broadcast %cst : f32 to vector<8x256xf32>
    %7 = arith.maximumf %5, %6 : vector<8x256xf32>
    %cst_4 = arith.constant 1.000000e+00 : f32
    %8 = vector.broadcast %cst_4 : f32 to vector<8x256xf32>
    %9 = arith.subf %8, %3 : vector<8x256xf32>
    %10 = math.log %9 : vector<8x256xf32>
    %cst_5 = arith.constant -1.000000e+02 : f32
    %11 = vector.broadcast %cst_5 : f32 to vector<8x256xf32>
    %12 = arith.maximumf %10, %11 : vector<8x256xf32>
    %13 = arith.subf %7, %12 : vector<8x256xf32>
    %14 = arith.mulf %4, %13 : vector<8x256xf32>
    %15 = arith.addf %12, %14 : vector<8x256xf32>
    %cst_6 = arith.constant 0.000000e+00 : f32
    %16 = vector.broadcast %cst_6 : f32 to vector<8x256xf32>
    %17 = arith.subf %16, %15 : vector<8x256xf32>
    %18 = tpu.iota {dimensions = array<i32: 1>} : vector<8x256xi32>
    %c0_7 = arith.constant 0 : index
    %c0_8 = arith.constant 0 : index
    %19 = vector.load %arg4[%c0_7, %c0_8] : memref<8x1xi32, #tpu.memory_space<vmem>>, vector<8x1xi32>
    %c32_i32 = arith.constant 32 : i32
    %20 = vector.broadcast %c32_i32 : i32 to vector<8x1xi32>
    %21 = arith.muli %19, %20 : vector<8x1xi32>
    %22 = vector.broadcast %21 : vector<8x1xi32> to vector<8x256xi32>
    %23 = arith.cmpi slt, %18, %22 : vector<8x256xi32>
    %cst_9 = arith.constant 0.000000e+00 : f32
    %24 = vector.broadcast %cst_9 : f32 to vector<8x256xf32>
    %25 = arith.select %23, %17, %24 : vector<8x256xi1>, vector<8x256xf32>
    %c0_10 = arith.constant 0 : index
    %c0_11 = arith.constant 0 : index
    %c0_12 = arith.constant 0 : index
    %26 = vector.load %arg5[%c0_10, %c0_11, %c0_12] : memref<1x8x256xf32, #tpu.memory_space<vmem>>, vector<1x8x256xf32>
    %27 = vector.shape_cast %26 : vector<1x8x256xf32> to vector<8x256xf32>
    %28 = vector.shape_cast %25 : vector<8x256xf32> to vector<1x8x256xf32>
    %cst_13 = arith.constant dense<0.000000e+00> : vector<8x256xf32>
    %29 = vector.multi_reduction <add>, %28, %cst_13 [0] : vector<1x8x256xf32> to vector<8x256xf32>
    %30 = arith.addf %27, %29 : vector<8x256xf32>
    %c0_14 = arith.constant 0 : index
    %c0_15 = arith.constant 0 : index
    %c0_16 = arith.constant 0 : index
    %31 = vector.load %arg5[%c0_14, %c0_15, %c0_16] : memref<1x8x256xf32, #tpu.memory_space<vmem>>, vector<1x8x256xf32>
    %32 = vector.shape_cast %31 : vector<1x8x256xf32> to vector<8x256xf32>
    %33 = vector.shape_cast %30 : vector<8x256xf32> to vector<1x8x256xf32>
    tpu.vector_store %arg5[%c0_14, %c0_15, %c0_16], %33 {strides = array<i32>} : memref<1x8x256xf32, #tpu.memory_space<vmem>>, vector<1x8x256xf32>,
    return
  }
  func.func @transform_0(%arg0: i32, %arg1: i32) -> (i32, i32) {
    %c1_i32 = arith.constant 1 : i32
    %0 = arith.muli %arg0, %c1_i32 : i32
    %1 = arith.addi %0, %arg1 : i32
    %c0_i32 = arith.constant 0 : i32
    %c0_i32_0 = arith.constant 0 : i32
    return %1, %c0_i32 : i32, i32
  }
  func.func @transform_1(%arg0: i32, %arg1: i32) -> (i32, i32) {
    %c1_i32 = arith.constant 1 : i32
    %0 = arith.muli %arg0, %c1_i32 : i32
    %1 = arith.addi %0, %arg1 : i32
    %c0_i32 = arith.constant 0 : i32
    %c0_i32_0 = arith.constant 0 : i32
    return %1, %c0_i32 : i32, i32
  }
  func.func @transform_2(%arg0: i32, %arg1: i32) -> (i32, i32) {
    %c1_i32 = arith.constant 1 : i32
    %0 = arith.muli %arg0, %c1_i32 : i32
    %1 = arith.addi %0, %arg1 : i32
    %c0_i32 = arith.constant 0 : i32
    %c0_i32_0 = arith.constant 0 : i32
    return %1, %c0_i32 : i32, i32
  }
  func.func @transform_3(%arg0: i32, %arg1: i32) -> (i32, i32, i32) {
    %c0_i32 = arith.constant 0 : i32
    %c0_i32_0 = arith.constant 0 : i32
    %c0_i32_1 = arith.constant 0 : i32
    return %arg0, %c0_i32, %c0_i32_0 : i32, i32, i32
  }
}

</mosaic_0001>

<bundles_post_ra>
// kernel: tpu_custom_call.1
= control target key start
LH: loop header
LB: loop body
LE: loop exit
PB: predicated region body
PF: predicated region fallthrough
CT: control target
= control target key end

     0   :  { %8 = vsyncpa [#allocation3], 0  ;;  %s958_s0 = inlined_call_operand.hbm [shape: f32[16,256], index: 0, kind: input, shape index: {}]   ;;  %s959_s1 = inlined_call_operand.hbm [shape: f32[16,256], index: 1, kind: input, shape index: {}]   ;;  %s960_s2 = inlined_call_operand.vmem [shape: s32[16,1], index: 2, kind: input, shape index: {}]   ;;  %s961_s3 = inlined_call_operand.hbm [shape: f32[2,8,256], index: 3, kind: output, shape index: {}]  }
   0x1   :  { %10 = vsyncpa [#allocation3 + $0x1], 0 }
   0x2   :  { %11 = vsyncpa [#allocation6], 0 }
   0x3   :  { %13 = vsyncpa [#allocation6 + $0x1], 0 }
   0x4   :  { %14 = vsyncpa [#allocation4], 0 }
   0x5   :  { %16 = vsyncpa [#allocation4 + $0x1], 0  ;;  %s724_s12 = smov 0   ;;  %s726_s13 = smov 0  }
   0x6   :  { %s728_s14 = smov 0   ;;  %s730_s15 = smov 0  }
   0x7   :  { %s732_s16 = smov 0   ;;  %s734_s17 = smov 0  }
   0x8 LB: > { %s451_s18 = sadd.s32 4294967295, %s698_s17   ;;  %s452_s19 = sadd.s32 4294967294, %s698_s17   ;;  %s698_s17 = sphi %s734_s17, %s22_s17   ;;  %s694_s16 = sphi %s732_s16, %s981_s16   ;;  %s690_s15 = sphi %s730_s15, %s980_s15   ;;  %s686_s14 = sphi %s728_s14, %s979_s14   ;;  %s682_s13 = sphi %s726_s13, %s978_s13   ;;  %s678_s12 = sphi %s724_s12, %s977_s12  }
   0x9   : > { %s34_s20 = sadd.s32 1, %s694_s16  ;;  %s43_s21 = sadd.s32 1, %s686_s14 }
   0xa   : > { %p36_p0 = scmp.ge.s32.totalorder %s34_s20, 2  ;;  %p50_p1 = scmp.ne.s32.totalorder %s686_s14, %s682_s13 }
   0xb   : > { %p51_p2 = scmp.eq.s32.totalorder %s698_s17, 0  ;;  %p56_p3 = scmp.ne.s32.totalorder %s682_s13, %s678_s12 }
   0xc   : > { %s983_s20 = smov (%p36_p0, %s34_s20), 0  ;;  %p57_p5 = scmp.eq.s32.totalorder %s451_s18, 0 }
   0xd   : > { %p765_p4 = por %p51_p2, %p50_p1  ;;  %s40_s23 = ssub.s32 %s694_s16, %s983_s20 }
   0xe   : > { %p136_p6 = scmp.eq.s32.totalorder %s451_s18, 1  ;;  %p41_p7 = scmp.eq.s32.totalorder %s40_s23, 0 }
   0xf   : > { %p771_p8 = por %p57_p5, %p56_p3  ;;  %p142_p10 = scmp.eq.s32.totalorder %s452_s19, 1 }
  0x10   : > { %p775_p9 = por %p136_p6, %p50_p1  ;;  %p491_p13 = scmp.lt.s32.totalorder %s698_s17, 2 }
  0x11   : > { %s965_s24 = scalar_select %p771_p8, 1, 0 }
  0x12   : > { %s966_s25 = scalar_select %p775_p9, 1, 0 }
  0x13   : > { %s780_s26 = scalar_select %p41_p7, %s686_s14, %s43_s21  }
  0x14   : > { %p782_p11 = por %p142_p10, %p56_p3  ;;  %s789_s28 = sand.u32 1, %s686_s14  }
  0x15   : > { %s455_s29 = sshll.u32 %s789_s28, 4  ;;  %s471_s30 = sshll.u32 %s694_s16, 8 }
  0x16   : > { %s967_s27 = scalar_select %p782_p11, 1, 0 }
  0x17   : > { %s798_s6 = scalar_lea.hbm %s958_s0, %s471_s30  ;;  %s166_s7 = scalar_lea.vmem [#allocation2], %s455_s29 }
  0x18   : > { %s175_s8 = sshll.u32 %s166_s7, 4  ;;  %p806_p0 = pnand %p491_p13, %p765_p4  ;;  %s802_s8 = int_to_ptr.vmem [resolvable:$true] %s175_s8 }
  0x19   : > { %s163_s10 = scalar_lea.sflag [#allocation3], %s789_s28  ;;  %s552_s11 = scalar_lea.hbm %s798_s6, 256 }
  0x1a   : > { %p553_p3 = scmp.ne.s32.totalorder %s798_s6, %s552_s11  ;;  %p554_p5 = pneg %p806_p0 }
  0x1b   : > { %s557_s21 = scalar_lea.hbm %s958_s0, 512  ;;  %p558_p4 = scmp.lt.u32.totalorder %s798_s6, %s958_s0 }
  0x1c   : > { %p555_p6 = pnand %p554_p5, %p553_p3  ;;  %p559_p10 = scmp.lt.u32.totalorder %s557_s21, %s552_s11 }
  0x1d   : > { %p561_p12 = scmp.lt.u32.totalorder %s552_s11, %s798_s6 }
  0x1e   : > { %p556_p7 = pneg %p555_p6  ;;  %p560_p13 = por %p559_p10, %p558_p4 }
  0x20   : > { %p562_p1 = por %p561_p12, %p560_p13 }
  0x22   : > { %p563_p2 = pnand %p562_p1, %p556_p7 }
  0x24   : > { %566 = shalt.err (!%p563_p2)
}
  0x25   : > { %s567_s4 = scalar_lea.vmem %s802_s8, 256  ;;  %s700_s5 = smov [#allocation2]  }
  0x26   : > { %p568_p3 = scmp.ne.s32.totalorder %s802_s8, %s567_s4  ;;  %s572_s7 = sshll.u32 %s700_s5, 4  ;;  %s573_s7 = int_to_ptr.vmem [resolvable:$false] %s572_s7 }
  0x27   : > { %s574_s18 = scalar_lea.vmem %s573_s7, 512  ;;  %p575_p9 = scmp.lt.s32.totalorder %s802_s8, %s573_s7 }
  0x28   : > { %p570_p6 = pnand %p568_p3, %p554_p5  ;;  %p576_p4 = scmp.lt.s32.totalorder %s574_s18, %s567_s4 }
  0x2a   : > { %p571_p11 = pneg %p570_p6  ;;  %p577_p10 = por %p576_p4, %p575_p9 }
  0x2c   : > { %p578_p12 = pnand %p577_p10, %p571_p11 }
  0x2e   : > { %581 = shalt.err (!%p578_p12)
}
  0x2f   : > { %483 = dma.hbm_to_vmem [thread:$0]  (!%p806_p0), %s798_s6, 256, %s802_s8, %s163_s10  }
  0x30   : > { %p969_p1 = scmp.lt.s32.totalorder %s698_s17, 3  ;;  %p970_p2 = scmp.ge.s32.totalorder %s698_s17, 1 }
  0x31   : > { %s851_s22 = scalar_lea.hbm %s959_s1, %s471_s30  ;;  %s186_s23 = scalar_lea.vmem [#allocation5], %s455_s29 }
  0x32   : > { %p842_p7 = pnand %p970_p2, %p969_p1  ;;  %s195_s4 = sshll.u32 %s186_s23, 4  ;;  %s196_s4 = int_to_ptr.vmem [resolvable:$true] %s195_s4 }
  0x33   : > { %s183_s6 = scalar_lea.sflag [#allocation6], %s789_s28  ;;  %s582_s8 = scalar_lea.hbm %s851_s22, 256 }
  0x34   : > { %s971_s11 = scalar_select %p842_p7, 1, 0 }
  0x35   : > { %p583_p9 = scmp.ne.s32.totalorder %s851_s22, %s582_s8  ;;  %s587_s30 = scalar_lea.hbm %s959_s1, 512 }
  0x36   : > { %p588_p3 = scmp.lt.u32.totalorder %s851_s22, %s959_s1  ;;  %p589_p6 = scmp.lt.u32.totalorder %s587_s30, %s582_s8 }
  0x37   : > { %p585_p11 = pnand %p583_p9, %p554_p5  ;;  %p591_p10 = scmp.lt.u32.totalorder %s582_s8, %s851_s22 }
  0x38   : > { %p590_p4 = por %p589_p6, %p588_p3 }
  0x39   : > { %p586_p13 = pneg %p585_p11 }
  0x3a   : > { %p592_p12 = por %p591_p10, %p590_p4 }
  0x3c   : > { %p593_p1 = pnand %p592_p12, %p586_p13 }
  0x3e   : > { %596 = shalt.err (!%p593_p1)
}
  0x3f   : > { %s597_s28 = scalar_lea.vmem %s196_s4, 256  ;;  %s701_s29 = smov [#allocation5]  }
  0x40   : > { %p598_p2 = scmp.ne.s32.totalorder %s196_s4, %s597_s28  ;;  %s602_s19 = sshll.u32 %s701_s29, 4  ;;  %s603_s19 = int_to_ptr.vmem [resolvable:$false] %s602_s19 }
  0x41   : > { %s604_s21 = scalar_lea.vmem %s603_s19, 512  ;;  %p605_p8 = scmp.lt.s32.totalorder %s196_s4, %s603_s19 }
  0x42   : > { %p600_p9 = pnand %p598_p2, %p554_p5  ;;  %p606_p7 = scmp.lt.s32.totalorder %s604_s21, %s597_s28 }
  0x44   : > { %p601_p11 = pneg %p600_p9  ;;  %p607_p3 = por %p606_p7, %p605_p8 }
  0x46   : > { %p608_p6 = pnand %p607_p3, %p601_p11 }
  0x48   : > { %611 = shalt.err (!%p608_p6)
}
  0x49   : > { %486 = dma.hbm_to_vmem [thread:$0]  (!%p806_p0), %s851_s22, 256, %s196_s4, %s183_s6  }
  0x4a   : > { %p972_p13 = scmp.ne.s32.totalorder %s971_s11, 0 }
  0x4b   : > { %s878_s23 = sand.u32 (!%p972_p13), 1, %s682_s13   ;;  %p973_p8 = scmp.ne.s32.totalorder (!%p972_p13), %s965_s24, 0 }
  0x4c   : > { %213 = sbr.rel (%p972_p13) target bundleno = 239 (0xef), region = 32  ;;  %s881_s8 = sshll.u32 (!%p972_p13), %s878_s23, 4 }
  0x4d   : > { %s216_s10 = scalar_lea.sflag (!%p972_p13), [#allocation3], %s878_s23  ;;  %s219_s5 = scalar_lea.vmem (!%p972_p13), [#allocation2], %s881_s8 }
  0x53   : > { %665 = dma.done.wait (%p973_p8), %s216_s10, 256  }
  0x54   : > { %667 = vsyncadd (%p973_p8), %s216_s10, 4294967040  ;;  %s225_s9 = scalar_lea.sflag [#allocation6], %s878_s23  ;;  %s228_s11 = scalar_lea.vmem [#allocation5], %s881_s8 }
  0x55   : > { %669 = dma.done.wait (%p973_p8), %s225_s9, 256  }
  0x56   : > { %671 = vsyncadd (%p973_p8), %s225_s9, 4294967040  ;;  %p264_p0 = scmp.lt.s32.totalorder %s690_s15, 1  ;;  %v702_v0 = vmov 0   ;;  %v275_v3 = vld [vmem:[%s219_s5] sm:$0xff]  ;;  %v276_v4 = vld [vmem:[%s219_s5 + $0x8] sm:$0xff]  ;;  %v301_v23 = vlaneseq  ;;  %s473_s24 = sshll.u32 %s690_s15, 8 }
  0x57   : > { %543 = vset.pattern.permute.xlu0 %v702_v0  ;;  %v285_v5 = vsub.f32 1.0, %v275_v3  ;;  %v286_v6 = vsub.f32 1.0, %v276_v4  ;;  %544 = vlog2.f32 %v275_v3  ;;  %v277_v21 = vld [vmem:[%s228_s11] sm:$0xff]  ;;  %v278_v22 = vld [vmem:[%s228_s11 + $0x8] sm:$0xff]  ;;  %s260_s18 = scalar_lea.vmem [#allocation7], %s881_s8  ;;  %s909_s21 = scalar_lea.hbm %s961_s3, %s473_s24 }
  0x58   : > { %s265_s22 = scalar_select %p264_p0, %s690_s15, 1  ;;  %546 = vlog2.f32 %v276_v4  ;;  %v302_v26 = vand.u32 127, %v301_v23 }
  0x59   : > { %548 = vlog2.f32 %v285_v5  ;;  %s336_s28 = sshll.u32 %s260_s18, 4  ;;  %s322_s10 = scalar_lea.sflag [#allocation4], %s878_s23  ;;  %s911_s28 = int_to_ptr.vmem [resolvable:$true] %s336_s28 }
  0x5a   : > { %s465_s4 = sshll.u32 %s265_s22, 3  ;;  %550 = vlog2.f32 %v286_v6  ;;  %v303_v29 = vadd.s32 128, %v302_v26  ;;  %s612_s15 = scalar_lea.vmem %s911_s28, 256 }
  0x5b   : > { %s267_s7 = scalar_lea.vmem %s960_s2, %s465_s4  ;;  %p613_p5 = scmp.ne.s32.totalorder %s911_s28, %s612_s15 }
  0x5c   : > { %v304_v1 = vld [vmem:[%s267_s7] sm:$0xff]  ;;  %p974_p7 = scmp.ne.s32.totalorder %s966_s25, 0  ;;  %s703_s8 = smov [#allocation7]  }
  0x5d   : > { %v305_v2 = vmul.u32 32, %v304_v1  ;;  %s616_s5 = sshll.u32 %s703_s8, 4  ;;  %s617_s5 = int_to_ptr.vmem [resolvable:$false] %s616_s5 }
  0x5e   : > { %p614_p4 = pnand %p613_p5, %p974_p7  ;;  %s618_s9 = scalar_lea.vmem %s617_s5, 512 }
  0x5f   : > { %307 = vperm.xlu0 %543, %v305_v2   ;;  %p619_p12 = scmp.lt.s32.totalorder %s911_s28, %s617_s5  ;;  %p620_p1 = scmp.lt.s32.totalorder %s618_s9, %s612_s15 }
  0x60   : > { %p615_p10 = pneg %p614_p4 }
  0x61   : > { %v545_v7 = vpop.eup %544  ;;  %p621_p2 = por %p620_p1, %p619_p12 }
  0x62   : > { %v547_v8 = vpop.eup %546  ;;  %v280_v11 = vmul.f32 0.6931472, %v545_v7 }
  0x63   : > { %v549_v9 = vpop.eup %548  ;;  %v282_v12 = vmul.f32 0.6931472, %v547_v8  ;;  %p622_p9 = pnand %p621_p2, %p615_p10 }
  0x64   : > { %v551_v10 = vpop.eup %550  ;;  %v288_v13 = vmul.f32 0.6931472, %v549_v9  ;;  %v283_v15 = vmax.f32 %v280_v11, -100.0 }
  0x65   : > { %v290_v14 = vmul.f32 0.6931472, %v551_v10  ;;  %v284_v16 = vmax.f32 %v282_v12, -100.0 }
  0x66   : > { %v291_v17 = vmax.f32 %v288_v13, -100.0 }
  0x67   : > { %v292_v18 = vmax.f32 %v290_v14, -100.0 }
  0x68   : > { %v293_v19 = vsub.f32 %v283_v15, %v291_v17 }
  0x69   : > { %v294_v20 = vsub.f32 %v284_v16, %v292_v18 }
  0x6a   : > { %v295_v24 = vmul.f32 %v293_v19, %v277_v21 }
  0x6b   : > { %v296_v25 = vmul.f32 %v294_v20, %v278_v22 }
  0x6c   : > { %v297_v27 = vadd.f32 %v295_v24, %v291_v17 }
  0x6d   : > { %v298_v28 = vadd.f32 %v296_v25, %v292_v18 }
  0x6e   : > { %v299_v30 = vsub.f32 0.0, %v297_v27 }
  0x6f   : > { %v300_v31 = vsub.f32 0.0, %v298_v28 }
  0xde   : > { %v308_v32 = vpop.permute.xlu0 %307 }
  0xdf   : > { %vm309_vm0 = vcmp.lt.s32.totalorder %v302_v26, %v308_v32  ;;  %vm310_vm1 = vcmp.lt.s32.totalorder %v303_v29, %v308_v32 }
  0xe0   : > { %v311_v33 = vsel %vm309_vm0, %v299_v30, 0.0  ;;  %v312_v34 = vsel %vm310_vm1, %v300_v31, 0.0 }
  0xe1   : > { %319 = vst [vmem:[%s260_s18] sm:$0xff] %v311_v33  ;;  %320 = vst [vmem:[%s260_s18 + $0x8] sm:$0xff] %v312_v34 }
  0xe2   : > { %625 = shalt.err (!%p622_p9)
}
  0xe3   : > { %s626_s23 = scalar_lea.hbm %s909_s21, 256  ;;  %s630_s4 = scalar_lea.hbm %s961_s3, 512 }
  0xe4   : > { %p627_p11 = scmp.ne.s32.totalorder %s909_s21, %s626_s23  ;;  %p631_p13 = scmp.lt.u32.totalorder %s909_s21, %s961_s3 }
  0xe5   : > { %p632_p8 = scmp.lt.u32.totalorder %s630_s4, %s626_s23  ;;  %p634_p5 = scmp.lt.u32.totalorder %s626_s23, %s909_s21 }
  0xe6   : > { %p628_p3 = pnand %p627_p11, %p974_p7 }
  0xe7   : > { %p633_p0 = por %p632_p8, %p631_p13 }
  0xe8   : > { %p629_p6 = pneg %p628_p3 }
  0xe9   : > { %p635_p4 = por %p634_p5, %p633_p0 }
  0xeb   : > { %p636_p10 = pnand %p635_p4, %p629_p6 }
  0xed   : > { %639 = shalt.err (!%p636_p10)
}
  0xee   : > { %478 = dma.vmem_to_hbm [thread:$0]  (%p974_p7), %s911_s28, 256, %s909_s21, %s322_s10  }
  0xef PF: > { %s348_s7 = sand.u32 1, %s678_s12   ;;  %p975_p12 = scmp.ne.s32.totalorder %s967_s27, 0 }
  0xf0   : > { %p976_p1 = scmp.ge.s32.totalorder %s698_s17, 2  ;;  %s349_s24 = scalar_lea.sflag [#allocation4], %s348_s7 }
  0xf2   : > { %p488_p2 = pnand %p976_p1, %p975_p12 }
  0xf4   : > { %673 = dma.done.wait (!%p488_p2), %s349_s24, 256  }
  0xf5   : > { %675 = vsyncadd (!%p488_p2), %s349_s24, 4294967040  ;;  %s22_s17 = sadd.s32 1, %s698_s17   ;;  %s977_s12 = smov %s682_s13 }
  0xf6   : > { %p19_p9 = scmp.ge.s32.totalorder %s22_s17, 4   ;;  %s978_s13 = smov %s686_s14 }
  0xf7   : > { %s979_s14 = smov %s780_s26  ;;  %s980_s15 = smov %s694_s16 }
  0xf8   : > { %s981_s16 = smov %s983_s20  ;;  %21 = sbr.rel (!%p19_p9) target bundleno = 8 (0x8), region = 97 }
  0xff   :  { %354 = vsyncpa [#allocation3], 1 }
 0x100   :  { %356 = vsyncpa [#allocation3 + $0x1], 1 }
 0x101   :  { %357 = vsyncpa [#allocation6], 1 }
 0x102   :  { %359 = vsyncpa [#allocation6 + $0x1], 1 }
 0x103   :  { %360 = vsyncpa [#allocation4], 1 }
 0x104   :  { %362 = vsyncpa [#allocation4 + $0x1], 1 }

</bundles_post_ra>
